<compile_context>
chip_gen: v7x
topology: tpu7x:2x2x1
jax: 0.10.0
libtpu: 0.0.40
codegen_flags: <defaults>
</compile_context>

<pallas_src>
import functools
from math import sqrt

import jax
import jax.numpy as jnp
from jax.experimental import pallas as pl
from jax.experimental.pallas import tpu as pltpu


def _linear_kernel(x_ref, w_ref, b_ref, o_ref, acc_ref):
    """One (tm x tn) output tile, accumulating over the K grid axis.

    Bias is folded into the accumulator init, so the epilogue is just a
    cast + lane-dense store.
    """
    k = pl.program_id(2)

    @pl.when(k == 0)
    def _():
        acc_ref[...] = jnp.broadcast_to(
            b_ref[...].astype(jnp.float32), acc_ref.shape
        )

    acc_ref[...] += jnp.dot(
        x_ref[...], w_ref[...], preferred_element_type=jnp.float32
    )

    @pl.when(k == pl.num_programs(2) - 1)
    def _():
        o_ref[...] = acc_ref[...].astype(o_ref.dtype)


def _round_up(v, m):
    return ((v + m - 1) // m) * m


def _pick_tiles(M, N, K):
    """Tile defaults that fit all generations (v5e/v6e/v7x) comfortably.

    tm: multiple of 8, capped at 256 (small-batch inference keeps tm == M so
        the weight panel streams from HBM exactly once).
    tn, tk: multiples of 128, capped at 512 (256-aligned when possible for the
        2x256^2 MXU on v6e/v7x; fine-grained enough for v5e's 4x128^2).
    f32 double-buffered VMEM for (256, 512, 512) tiles is ~5 MiB -> safe even
    against v7x's 64 MiB physical / 32 MiB default scoped VMEM.
    """
    tm = _round_up(M, 8) if M <= 256 else 256
    tn = _round_up(N, 128) if N <= 512 else 512
    tk = _round_up(K, 128) if K <= 512 else 512
    return tm, tn, tk


def _vmem_budget_bytes(tm, tn, tk, itemsize=4):
    # double-buffered X, W, bias inputs + double-buffered output + f32 acc
    inputs = 2 * (tm * tk + tk * tn + tn) * itemsize
    output = 2 * (tm * tn) * itemsize
    acc = (tm * tn) * 4
    needed = inputs + output + acc
    # ~2x headroom, floor at 32 MiB (>= default scoped), cap at 48 MiB so we
    # never exceed what v7x (64 MiB physical per TC) can actually provide.
    return int(min(max(2 * needed, 32 * 2**20), 48 * 2**20))


@functools.partial(jax.jit, static_argnames=("tm", "tn", "tk"))
def linear_forward(x, weight, bias, *, tm=None, tn=None, tk=None):
    """z = x @ weight + bias as a tiled, pipelined Pallas TPU kernel.

    x: (M, K), weight: (K, N), bias: (1, N) -> out (M, N)
    """
    M, K = x.shape
    Kw, N = weight.shape
    assert K == Kw, (K, Kw)
    assert bias.shape == (1, N), bias.shape

    dtm, dtn, dtk = _pick_tiles(M, N, K)
    tm = dtm if tm is None else tm
    tn = dtn if tn is None else tn
    tk = dtk if tk is None else tk

    # Zero-pad so every block is full: correct K-tail accumulation and
    # lane-dense (128-aligned) output stores. Padding is sliced off at the end.
    Mp, Np, Kp = _round_up(M, tm), _round_up(N, tn), _round_up(K, tk)
    if (Mp, Kp) != (M, K):
        x = jnp.pad(x, ((0, Mp - M), (0, Kp - K)))
    if (Kp, Np) != (K, N):
        weight = jnp.pad(weight, ((0, Kp - K), (0, Np - N)))
    if Np != N:
        bias = jnp.pad(bias, ((0, 0), (0, Np - N)))

    grid = (Mp // tm, Np // tn, Kp // tk)

    out_padded = pl.pallas_call(
        _linear_kernel,
        out_shape=jax.ShapeDtypeStruct((Mp, Np), x.dtype),
        grid_spec=pltpu.PrefetchScalarGridSpec(
            num_scalar_prefetch=0,
            grid=grid,
            in_specs=[
                pl.BlockSpec((tm, tk), lambda i, j, k: (i, k)),  # X tile
                pl.BlockSpec((tk, tn), lambda i, j, k: (k, j)),  # W tile
                pl.BlockSpec((1, tn), lambda i, j, k: (0, j)),   # bias tile
            ],
            out_specs=pl.BlockSpec((tm, tn), lambda i, j, k: (i, j)),
            scratch_shapes=[pltpu.VMEM((tm, tn), jnp.float32)],
        ),
        compiler_params=pltpu.CompilerParams(
            dimension_semantics=("parallel", "parallel", "arbitrary"),
            vmem_limit_bytes=_vmem_budget_bytes(tm, tn, tk, x.dtype.itemsize),
        ),
        cost_estimate=pl.CostEstimate(
            flops=2 * M * N * K,
            bytes_accessed=x.dtype.itemsize * (M * K + K * N + M * N),
            transcendentals=0,
        ),
    )(x, weight, bias)

    if (Mp, Np) != (M, N):
        out_padded = out_padded[:M, :N]
    return out_padded


def init_linear_params(key, input_size, output_size, dtype=jnp.float32):
    """Deterministic init matching the PyTorch module's default:
    uniform(-1/sqrt(input_size), 1/sqrt(input_size)) for weight and bias."""
    bound = 1.0 / sqrt(input_size)
    kw, kb = jax.random.split(key)
    weight = jax.random.uniform(
        kw, (input_size, output_size), dtype=dtype, minval=-bound, maxval=bound
    )
    bias = jax.random.uniform(
        kb, (1, output_size), dtype=dtype, minval=-bound, maxval=bound
    )
    return weight, bias


if __name__ == "__main__":
    key = jax.random.PRNGKey(0)
    k_x, k_p = jax.random.split(key)

    batch = 8
    input_size = 32
    output_size = 16

    x = jax.random.normal(k_x, (batch, input_size), dtype=jnp.float32)
    weight, bias = init_linear_params(k_p, input_size, output_size)

    z = linear_forward(x, weight, bias)
    jax.block_until_ready(z)

    # sanity check against plain JAX reference
    z_ref = x @ weight + bias
    assert z.shape == z_ref.shape, (z.shape, z_ref.shape)
    assert jnp.allclose(z, z_ref, atol=1e-5, rtol=1e-5), "mismatch vs reference"

    # also exercise a shape that actually tiles / pads on every axis
    M2, K2, N2 = 260, 384, 200
    x2 = jax.random.normal(jax.random.PRNGKey(1), (M2, K2), dtype=jnp.float32)
    w2, b2 = init_linear_params(jax.random.PRNGKey(2), K2, N2)
    z2 = linear_forward(x2, w2, b2)
    jax.block_until_ready(z2)
    assert jnp.allclose(z2, x2 @ w2 + b2, atol=1e-4, rtol=1e-4), "mismatch (tiled)"

    print("KERNEL_OK")
</pallas_src>

<mosaic_0001>
module attributes {stable_mosaic.version = 11 : i64} {
  func.func @_linear_kernel(%arg0: i32, %arg1: i32, %arg2: i32, %arg3: memref<8x128xf32, #tpu.memory_space<vmem>>, %arg4: memref<128x128xf32, #tpu.memory_space<vmem>>, %arg5: memref<1x128xf32, #tpu.memory_space<vmem>>, %arg6: memref<8x128xf32, #tpu.memory_space<vmem>>, %arg7: memref<8x128xf32, #tpu.memory_space<vmem>>) attributes {dimension_semantics = [#tpu.dimension_semantics<parallel>, #tpu.dimension_semantics<parallel>, #tpu.dimension_semantics<arbitrary>], iteration_bounds = array<i64: 1, 1, 1>, scalar_prefetch = 0 : i64, scratch_operands = 1 : i64, tpu.core_type = #tpu.core_type<tc>, window_params = [{transform_indices = @transform_0, window_bounds = array<i64: 8, 128>}, {transform_indices = @transform_1, window_bounds = array<i64: 128, 128>}, {transform_indices = @transform_2, window_bounds = array<i64: 1, 128>}, {transform_indices = @transform_3, window_bounds = array<i64: 8, 128>}]} {
    %c0_i32 = arith.constant 0 : i32
    %0 = arith.cmpi eq, %arg2, %c0_i32 : i32
    %1 = arith.extui %0 : i1 to i32
    %c0_i32_0 = arith.constant 0 : i32
    %2 = arith.cmpi ne, %1, %c0_i32_0 : i32
    scf.if %2 {
      %c0_10 = arith.constant 0 : index
      %c0_11 = arith.constant 0 : index
      %12 = vector.load %arg5[%c0_10, %c0_11] : memref<1x128xf32, #tpu.memory_space<vmem>>, vector<1x128xf32>
      %13 = vector.shape_cast %12 : vector<1x128xf32> to vector<1x128xf32>
      %14 = vector.broadcast %13 : vector<1x128xf32> to vector<8x128xf32>
      %c0_12 = arith.constant 0 : index
      %c0_13 = arith.constant 0 : index
      %15 = vector.load %arg7[%c0_12, %c0_13] : memref<8x128xf32, #tpu.memory_space<vmem>>, vector<8x128xf32>
      tpu.vector_store %arg7[%c0_12, %c0_13], %14 {strides = array<i32>} : memref<8x128xf32, #tpu.memory_space<vmem>>, vector<8x128xf32>,
    } else {
    }
    %c0 = arith.constant 0 : index
    %c0_1 = arith.constant 0 : index
    %3 = vector.load %arg7[%c0, %c0_1] : memref<8x128xf32, #tpu.memory_space<vmem>>, vector<8x128xf32>
    %c0_2 = arith.constant 0 : index
    %c0_3 = arith.constant 0 : index
    %4 = vector.load %arg3[%c0_2, %c0_3] : memref<8x128xf32, #tpu.memory_space<vmem>>, vector<8x128xf32>
    %c0_4 = arith.constant 0 : index
    %c0_5 = arith.constant 0 : index
    %5 = vector.load %arg4[%c0_4, %c0_5] : memref<128x128xf32, #tpu.memory_space<vmem>>, vector<128x128xf32>
    %cst = arith.constant dense<0.000000e+00> : vector<8x128xf32>
    %6 = tpu.matmul %4, %5, %cst {dimension_numbers = #tpu.dot_dimension_numbers<[1], [0], [0], [1], [0, 0, 1, 1], [], []>} : vector<8x128xf32>, vector<128x128xf32>, vector<8x128xf32> -> vector<8x128xf32>
    %7 = arith.addf %3, %6 : vector<8x128xf32>
    %c0_6 = arith.constant 0 : index
    %c0_7 = arith.constant 0 : index
    %8 = vector.load %arg7[%c0_6, %c0_7] : memref<8x128xf32, #tpu.memory_space<vmem>>, vector<8x128xf32>
    tpu.vector_store %arg7[%c0_6, %c0_7], %7 {strides = array<i32>} : memref<8x128xf32, #tpu.memory_space<vmem>>, vector<8x128xf32>,
    %c0_i32_8 = arith.constant 0 : i32
    %9 = arith.cmpi eq, %arg2, %c0_i32_8 : i32
    %10 = arith.extui %9 : i1 to i32
    %c0_i32_9 = arith.constant 0 : i32
    %11 = arith.cmpi ne, %10, %c0_i32_9 : i32
    scf.if %11 {
      %c0_10 = arith.constant 0 : index
      %c0_11 = arith.constant 0 : index
      %12 = vector.load %arg7[%c0_10, %c0_11] : memref<8x128xf32, #tpu.memory_space<vmem>>, vector<8x128xf32>
      %c0_12 = arith.constant 0 : index
      %c0_13 = arith.constant 0 : index
      %13 = vector.load %arg6[%c0_12, %c0_13] : memref<8x128xf32, #tpu.memory_space<vmem>>, vector<8x128xf32>
      tpu.vector_store %arg6[%c0_12, %c0_13], %12 {strides = array<i32>} : memref<8x128xf32, #tpu.memory_space<vmem>>, vector<8x128xf32>,
    } else {
    }
    return
  }
  func.func @transform_0(%arg0: i32, %arg1: i32, %arg2: i32) -> (i32, i32) {
    %c0_i32 = arith.constant 0 : i32
    return %arg0, %arg2 : i32, i32
  }
  func.func @transform_1(%arg0: i32, %arg1: i32, %arg2: i32) -> (i32, i32) {
    %c0_i32 = arith.constant 0 : i32
    return %arg2, %arg1 : i32, i32
  }
  func.func @transform_2(%arg0: i32, %arg1: i32, %arg2: i32) -> (i32, i32) {
    %c0_i32 = arith.constant 0 : i32
    %c0_i32_0 = arith.constant 0 : i32
    return %c0_i32, %arg1 : i32, i32
  }
  func.func @transform_3(%arg0: i32, %arg1: i32, %arg2: i32) -> (i32, i32) {
    %c0_i32 = arith.constant 0 : i32
    return %arg0, %arg1 : i32, i32
  }
}

</mosaic_0001>

<bundles_post_ra>
// kernel: linear_forward.1
= control target key start
LH: loop header
LB: loop body
LE: loop exit
PB: predicated region body
PF: predicated region fallthrough
CT: control target
= control target key end

     0   :  { %v241_v3 = vmov 0.0|0.0   ;;  %vm242_vm0 = vmmov 0   ;;  %v243_v6 = vmov 0.0   ;;  %s331_s0 = inlined_call_operand.vmem [shape: f32[8,128], index: 0, kind: input, shape index: {}]   ;;  %s332_s1 = inlined_call_operand.vmem [shape: f32[128,128], index: 1, kind: input, shape index: {}]   ;;  %s333_s2 = inlined_call_operand.vmem [shape: f32[1,128], index: 2, kind: input, shape index: {}]   ;;  %s334_s3 = inlined_call_operand.hbm [shape: f32[8,128], index: 3, kind: output, shape index: {}]  }
   0x1   :  { %v29_v0 = vld [vmem:[%s332_s1] sm:$0xff]  ;;  %v30_v1 = vld [vmem:[%s332_s1 + $0x8] sm:$0xff]  ;;  %v31_v2 = vld [vmem:[%s332_s1 + $0x10] sm:$0xff]  ;;  %189 = vmatprep.subr.bf16.mxu0 %v241_v3  ;;  %186 = vmatprep.mubr.msk.f32.mxu0 %vm242_vm0, %v243_v6 }
   0x2   :  { %v190_v4 = vpack.c.bf16 %v30_v1, %v29_v0  ;;  %v32_v5 = vld [vmem:[%s332_s1 + $0x18] sm:$0xff]  ;;  %v33_v8 = vld [vmem:[%s332_s1 + $0x20] sm:$0xff]  ;;  %v34_v9 = vld [vmem:[%s332_s1 + $0x28] sm:$0xff] }
   0x3   :  { %v193_v7 = vpack.c.bf16 %v32_v5, %v31_v2 }
   0x4   :  { %191 = vmatpush3.bf16.msra.mxu0 %v190_v4 }
   0x5   :  { %192 = vmatprep.subr.bf16.mxu0 %v241_v3 }
   0x6   :  { %8 = vsyncpa [#allocation4], 0  ;;  %v196_v10 = vpack.c.bf16 %v34_v9, %v33_v8  ;;  %v35_v11 = vld [vmem:[%s332_s1 + $0x30] sm:$0xff]  ;;  %v36_v12 = vld [vmem:[%s332_s1 + $0x38] sm:$0xff]  ;;  %s244_s21 = smov [#allocation3]  }
   0x7   :  { %v199_v13 = vpack.c.bf16 %v36_v12, %v35_v11  ;;  %v37_v14 = vld [vmem:[%s332_s1 + $0x40] sm:$0xff]  ;;  %v38_v15 = vld [vmem:[%s332_s1 + $0x48] sm:$0xff]  ;;  %v39_v17 = vld [vmem:[%s332_s1 + $0x50] sm:$0xff]  ;;  %s128_s22 = sshll.u32 %s244_s21, 4  ;;  %s129_s22 = int_to_ptr.vmem [resolvable:$true] %s128_s22 }
   0x8   :  { %194 = vmatpush3.bf16.msra.mxu0 %v193_v7  ;;  %v202_v16 = vpack.c.bf16 %v38_v15, %v37_v14  ;;  %v40_v18 = vld [vmem:[%s332_s1 + $0x58] sm:$0xff]  ;;  %v41_v20 = vld [vmem:[%s332_s1 + $0x60] sm:$0xff]  ;;  %v42_v21 = vld [vmem:[%s332_s1 + $0x68] sm:$0xff]  ;;  %p222_p1 = scmp.lt.s32.totalorder %s129_s22, %s129_s22 }
   0x9   :  { %195 = vmatprep.subr.bf16.mxu0 %v241_v3  ;;  %v205_v19 = vpack.c.bf16 %v40_v18, %v39_v17  ;;  %v208_v22 = vpack.c.bf16 %v42_v21, %v41_v20  ;;  %v43_v23 = vld [vmem:[%s332_s1 + $0x70] sm:$0xff]  ;;  %v44_v24 = vld [vmem:[%s332_s1 + $0x78] sm:$0xff]  ;;  %v28_v26 = vld [vmem:[%s331_s0] sm:$0xff]  ;;  %s217_s1 = scalar_lea.vmem %s129_s22, 128 }
   0xa   :  { %v211_v25 = vpack.c.bf16 %v44_v24, %v43_v23  ;;  %v136_v27 = vld [vmem:[%s333_s2] ss:$0 sm:$0xff]  ;;  %p218_p0 = scmp.ne.s32.totalorder %s129_s22, %s217_s1  ;;  %p223_p2 = scmp.lt.s32.totalorder %s217_s1, %s217_s1 }
   0xc   :  { %197 = vmatpush3.bf16.msra.mxu0 %v196_v10  ;;  %p224_p3 = por %p223_p2, %p222_p1 }
   0xd   :  { %198 = vmatprep.subr.bf16.mxu0 %v241_v3 }
   0xe   :  { %p225_p4 = pnand %p224_p3, %p218_p0 }
  0x10   :  { %200 = vmatpush3.bf16.msra.mxu0 %v199_v13 }
  0x11   :  { %201 = vmatprep.subr.bf16.mxu0 %v241_v3 }
  0x14   :  { %203 = vmatpush3.bf16.msra.mxu0 %v202_v16 }
  0x15   :  { %204 = vmatprep.subr.bf16.mxu0 %v241_v3 }
  0x18   :  { %206 = vmatpush3.bf16.msra.mxu0 %v205_v19 }
  0x19   :  { %207 = vmatprep.subr.bf16.mxu0 %v241_v3 }
  0x1c   :  { %209 = vmatpush3.bf16.msra.mxu0 %v208_v22 }
  0x1d   :  { %210 = vmatprep.subr.bf16.mxu0 %v241_v3 }
  0x20   :  { %212 = vmatpush3.bf16.msra.mxu0 %v211_v25 }
  0x23   :  { %187 = vmatmul.mubr.f32.vlgmr.msra.gmra.mrb[0].mxu0 %v28_v26 }
  0xf6   :  { %v111_v28 = vpop.f32.mrb[0].mxu0 }
  0xf7   :  { %v115_v29 = vadd.f32 %v136_v27, %v111_v28  ;;  %v188_v30 = vpop.f32.mrb[1].mxu0 }
  0xf9   :  { %121 = vst [vmem:[#allocation3] sm:$0xff] %v115_v29 }
  0xfa   :  { %228 = shalt.err (!%p225_p4)
}
  0xfb   :  { %s229_s24 = scalar_lea.hbm %s334_s3, 128 }
  0xfc   :  { %p230_p5 = scmp.ne.s32.totalorder %s334_s3, %s229_s24  ;;  %p233_p6 = scmp.lt.u32.totalorder %s229_s24, %s334_s3 }
  0xfe   :  { %p235_p7 = pnand %p233_p6, %p230_p5 }
 0x100   :  { %238 = shalt.err (!%p235_p7)
}
 0x101   :  { %131 = dma.vmem_to_hbm [thread:$0]  %s129_s22, 128, %s334_s3, [#allocation4]  }
 0x102   :  { %239 = dma.done.wait [#allocation4], 128  }
 0x103   :  { %240 = vsyncadd [#allocation4], 4294967168 }
 0x104   :  { %135 = vsyncpa [#allocation4], 1 }

</bundles_post_ra>
